<compile_context>
chip_gen: v6e
topology: v6e:2x2x1
jax: 0.10.0
libtpu: 0.0.40
codegen_flags: <defaults>
</compile_context>

<pallas_src>
import math

import jax
import jax.numpy as jnp
from jax.experimental import pallas as pl
from jax.experimental.pallas import tpu as pltpu


def _round_up(v, m):
    return ((v + m - 1) // m) * m


def _pick_tile(requested, dim_pad):
    """Largest multiple of 128 that divides dim_pad and is <= requested."""
    best = 128
    t = 128
    limit = min(requested, dim_pad)
    while t <= limit:
        if dim_pad % t == 0:
            best = t
        t += 128
    return best


def gate_kernel(xk_ref, w_ref, xg_ref, o_ref, acc_ref):
    """One (i, j, k) grid step of the tiled gated projection.

    xk_ref : (TM, TK) tile of x used as matmul LHS (K slice).
    w_ref  : (TN, TK) tile of the weight in nn.Linear (out, in) layout.
    xg_ref : (TM, TN) tile of x used for the sigmoid gate (N slice).
    o_ref  : (TM, TN) output tile.
    acc_ref: (TM, TN) f32 accumulator scratch, resident across the K axis.
    """
    k = pl.program_id(2)

    @pl.when(k == 0)
    def _():
        acc_ref[...] = jnp.zeros_like(acc_ref)

    # x @ W^T without materializing a transposed weight in HBM: contract the
    # K (= in_features) dim of both operands directly on the MXU.
    acc_ref[...] += jax.lax.dot_general(
        xk_ref[...], w_ref[...],
        dimension_numbers=(((1,), (1,)), ((), ())),
        preferred_element_type=jnp.float32,
    )

    @pl.when(k == pl.num_programs(2) - 1)
    def _():
        gate = jax.nn.sigmoid(xg_ref[...].astype(jnp.float32))
        o_ref[...] = (acc_ref[...] * gate).astype(o_ref.dtype)


def gate_forward(x, weight, *, tile_m=256, tile_n=256, tile_k=512):
    """Gate forward: (x @ weight.T) * sigmoid(x).

    x      : (B, L, D) activations (f32 or bf16).
    weight : (D, D) nn.Linear weight in (out_features, in_features) layout.
    """
    B, L, D = x.shape
    M = B * L

    # --- tile sizes / padded dims -------------------------------------------
    d_pad = _round_up(D, 128)                      # lane-dense N and K
    tn = _pick_tile(_round_up(tile_n, 128), d_pad)  # divides d_pad, mult. of 128
    tk = _pick_tile(_round_up(tile_k, 128), d_pad)  # divides d_pad, mult. of 128
    tm = min(_round_up(tile_m, 8), _round_up(M, 8))  # mult. of 8, no overkill on tiny M
    m_pad = _round_up(M, tm)

    # --- wrapper-side zero padding (ragged M, small / unaligned D) -----------
    x2d = x.reshape(M, D)
    x_pad = jnp.pad(x2d, ((0, m_pad - M), (0, d_pad - D)))
    w_pad = jnp.pad(weight, ((0, d_pad - D), (0, d_pad - D)))

    grid = (m_pad // tm, d_pad // tn, d_pad // tk)

    out_pad = pl.pallas_call(
        gate_kernel,
        out_shape=jax.ShapeDtypeStruct((m_pad, d_pad), x.dtype),
        grid_spec=pltpu.PrefetchScalarGridSpec(
            num_scalar_prefetch=0,
            grid=grid,
            in_specs=[
                # LHS tile for the matmul: varies along K (innermost axis).
                pl.BlockSpec((tm, tk), lambda i, j, k: (i, k)),
                # Weight tile in (out, in) layout -> block (j, k); no HBM transpose.
                pl.BlockSpec((tn, tk), lambda i, j, k: (j, k)),
                # Same x, N-sliced, for the sigmoid gate (constant across K,
                # so it is not re-fetched while k advances).
                pl.BlockSpec((tm, tn), lambda i, j, k: (i, j)),
            ],
            out_specs=pl.BlockSpec((tm, tn), lambda i, j, k: (i, j)),
            scratch_shapes=[pltpu.VMEM((tm, tn), jnp.float32)],
        ),
        compiler_params=pltpu.CompilerParams(
            # M and N shard across TensorCores (megacore); K is the reduction axis.
            dimension_semantics=("parallel", "parallel", "arbitrary"),
        ),
    )(x_pad, w_pad, x_pad)

    return out_pad[:M, :D].reshape(B, L, D)


if __name__ == "__main__":
    key = jax.random.PRNGKey(0)
    kx, kw, kx2, kw2 = jax.random.split(key, 4)

    # Primary small shape consistent with the module: batch=2, len=8, dim=32.
    B, L, D = 2, 8, 32
    x = jax.random.normal(kx, (B, L, D), dtype=jnp.float32)
    bound = 1.0 / (D ** 0.5)  # nn.Linear default init range
    weight = jax.random.uniform(kw, (D, D), dtype=jnp.float32,
                                minval=-bound, maxval=bound)

    out = gate_forward(x, weight)
    jax.block_until_ready(out)
    ref = (x @ weight.T) * jax.nn.sigmoid(x)
    assert jnp.allclose(out, ref, atol=1e-4, rtol=1e-4), "mismatch vs reference (case 1)"

    # Ragged shape exercising the padding / tail path (M and D not tile-aligned).
    B2, L2, D2 = 3, 5, 192
    x2 = jax.random.normal(kx2, (B2, L2, D2), dtype=jnp.float32)
    bound2 = 1.0 / (D2 ** 0.5)
    weight2 = jax.random.uniform(kw2, (D2, D2), dtype=jnp.float32,
                                 minval=-bound2, maxval=bound2)
    out2 = gate_forward(x2, weight2)
    jax.block_until_ready(out2)
    ref2 = (x2 @ weight2.T) * jax.nn.sigmoid(x2)
    assert jnp.allclose(out2, ref2, atol=1e-4, rtol=1e-4), "mismatch vs reference (case 2)"

    print("KERNEL_OK")
</pallas_src>

<mosaic_0001>
module attributes {stable_mosaic.version = 11 : i64} {
  func.func @gate_kernel(%arg0: i32, %arg1: i32, %arg2: i32, %arg3: memref<16x128xf32, #tpu.memory_space<vmem>>, %arg4: memref<128x128xf32, #tpu.memory_space<vmem>>, %arg5: memref<16x128xf32, #tpu.memory_space<vmem>>, %arg6: memref<16x128xf32, #tpu.memory_space<vmem>>, %arg7: memref<16x128xf32, #tpu.memory_space<vmem>>) attributes {dimension_semantics = [#tpu.dimension_semantics<parallel>, #tpu.dimension_semantics<parallel>, #tpu.dimension_semantics<arbitrary>], iteration_bounds = array<i64: 1, 1, 1>, scalar_prefetch = 0 : i64, scratch_operands = 1 : i64, tpu.core_type = #tpu.core_type<tc>, window_params = [{transform_indices = @transform_0, window_bounds = array<i64: 16, 128>}, {transform_indices = @transform_1, window_bounds = array<i64: 128, 128>}, {transform_indices = @transform_2, window_bounds = array<i64: 16, 128>}, {transform_indices = @transform_3, window_bounds = array<i64: 16, 128>}]} {
    %c0_i32 = arith.constant 0 : i32
    %0 = arith.cmpi eq, %arg2, %c0_i32 : i32
    %1 = arith.extui %0 : i1 to i32
    %c0_i32_0 = arith.constant 0 : i32
    %2 = arith.cmpi ne, %1, %c0_i32_0 : i32
    scf.if %2 {
      %cst_10 = arith.constant 0.000000e+00 : f32
      %12 = vector.broadcast %cst_10 : f32 to vector<16x128xf32>
      %c0_11 = arith.constant 0 : index
      %c0_12 = arith.constant 0 : index
      %13 = vector.load %arg7[%c0_11, %c0_12] : memref<16x128xf32, #tpu.memory_space<vmem>>, vector<16x128xf32>
      tpu.vector_store %arg7[%c0_11, %c0_12], %12 {strides = array<i32>} : memref<16x128xf32, #tpu.memory_space<vmem>>, vector<16x128xf32>,
    } else {
    }
    %c0 = arith.constant 0 : index
    %c0_1 = arith.constant 0 : index
    %3 = vector.load %arg7[%c0, %c0_1] : memref<16x128xf32, #tpu.memory_space<vmem>>, vector<16x128xf32>
    %c0_2 = arith.constant 0 : index
    %c0_3 = arith.constant 0 : index
    %4 = vector.load %arg3[%c0_2, %c0_3] : memref<16x128xf32, #tpu.memory_space<vmem>>, vector<16x128xf32>
    %c0_4 = arith.constant 0 : index
    %c0_5 = arith.constant 0 : index
    %5 = vector.load %arg4[%c0_4, %c0_5] : memref<128x128xf32, #tpu.memory_space<vmem>>, vector<128x128xf32>
    %cst = arith.constant dense<0.000000e+00> : vector<16x128xf32>
    %6 = tpu.matmul %4, %5, %cst {dimension_numbers = #tpu.dot_dimension_numbers<[1], [1], [0], [0], [0, 0, 1, 0], [], []>} : vector<16x128xf32>, vector<128x128xf32>, vector<16x128xf32> -> vector<16x128xf32>
    %7 = arith.addf %3, %6 : vector<16x128xf32>
    %c0_6 = arith.constant 0 : index
    %c0_7 = arith.constant 0 : index
    %8 = vector.load %arg7[%c0_6, %c0_7] : memref<16x128xf32, #tpu.memory_space<vmem>>, vector<16x128xf32>
    tpu.vector_store %arg7[%c0_6, %c0_7], %7 {strides = array<i32>} : memref<16x128xf32, #tpu.memory_space<vmem>>, vector<16x128xf32>,
    %c0_i32_8 = arith.constant 0 : i32
    %9 = arith.cmpi eq, %arg2, %c0_i32_8 : i32
    %10 = arith.extui %9 : i1 to i32
    %c0_i32_9 = arith.constant 0 : i32
    %11 = arith.cmpi ne, %10, %c0_i32_9 : i32
    scf.if %11 {
      %c0_10 = arith.constant 0 : index
      %c0_11 = arith.constant 0 : index
      %12 = vector.load %arg5[%c0_10, %c0_11] : memref<16x128xf32, #tpu.memory_space<vmem>>, vector<16x128xf32>
      %13 = arith.negf %12 : vector<16x128xf32>
      %14 = math.exp %13 : vector<16x128xf32>
      %cst_12 = arith.constant 1.000000e+00 : f32
      %15 = vector.broadcast %cst_12 : f32 to vector<16x128xf32>
      %16 = arith.addf %15, %14 : vector<16x128xf32>
      %17 = arith.divf %15, %16 : vector<16x128xf32>
      %c0_13 = arith.constant 0 : index
      %c0_14 = arith.constant 0 : index
      %18 = vector.load %arg7[%c0_13, %c0_14] : memref<16x128xf32, #tpu.memory_space<vmem>>, vector<16x128xf32>
      %19 = arith.mulf %18, %17 : vector<16x128xf32>
      %c0_15 = arith.constant 0 : index
      %c0_16 = arith.constant 0 : index
      %20 = vector.load %arg6[%c0_15, %c0_16] : memref<16x128xf32, #tpu.memory_space<vmem>>, vector<16x128xf32>
      tpu.vector_store %arg6[%c0_15, %c0_16], %19 {strides = array<i32>} : memref<16x128xf32, #tpu.memory_space<vmem>>, vector<16x128xf32>,
    } else {
    }
    return
  }
  func.func @transform_0(%arg0: i32, %arg1: i32, %arg2: i32) -> (i32, i32) {
    %c0_i32 = arith.constant 0 : i32
    return %arg0, %arg2 : i32, i32
  }
  func.func @transform_1(%arg0: i32, %arg1: i32, %arg2: i32) -> (i32, i32) {
    %c0_i32 = arith.constant 0 : i32
    return %arg1, %arg2 : i32, i32
  }
  func.func @transform_2(%arg0: i32, %arg1: i32, %arg2: i32) -> (i32, i32) {
    %c0_i32 = arith.constant 0 : i32
    return %arg0, %arg1 : i32, i32
  }
  func.func @transform_3(%arg0: i32, %arg1: i32, %arg2: i32) -> (i32, i32) {
    %c0_i32 = arith.constant 0 : i32
    return %arg0, %arg1 : i32, i32
  }
}

</mosaic_0001>

<bundles_post_ra>
// kernel: tpu_custom_call.1
= control target key start
LH: loop header
LB: loop body
LE: loop exit
PB: predicated region body
PF: predicated region fallthrough
CT: control target
= control target key end

     0   :  { %8 = vsyncpa [#allocation4], 0  ;;  %s407_s0 = inlined_call_operand.hbm [shape: f32[16,128], index: 0, kind: input, shape index: {}]   ;;  %s408_s1 = inlined_call_operand.hbm [shape: f32[128,128], index: 1, kind: input, shape index: {}]   ;;  %s409_s2 = inlined_call_operand.hbm [shape: f32[16,128], index: 2, kind: input, shape index: {}]   ;;  %s410_s3 = inlined_call_operand.hbm [shape: f32[16,128], index: 3, kind: output, shape index: {}]  }
   0x1   :  { %9 = vsyncpa [#allocation7], 0 }
   0x2   :  { %10 = vsyncpa [#allocation5], 0  ;;  %s357_s12 = smov [#allocation6]   ;;  %s358_s14 = smov [#allocation3]  }
   0x3   :  { %s28_s13 = sshll.u32 %s357_s12, 4  ;;  %s16_s15 = sshll.u32 %s358_s14, 4  ;;  %s29_s13 = int_to_ptr.vmem [resolvable:$true] %s28_s13  ;;  %s17_s15 = int_to_ptr.vmem [resolvable:$true] %s16_s15 }
   0x4   :  { %s279_s16 = scalar_lea.vmem %s29_s13, 2048  ;;  %p284_p1 = scmp.lt.s32.totalorder %s29_s13, %s29_s13 }
   0x5   :  { %p280_p0 = scmp.ne.s32.totalorder %s29_s13, %s279_s16  ;;  %p285_p2 = scmp.lt.s32.totalorder %s279_s16, %s279_s16 }
   0x7   :  { %p286_p3 = por %p285_p2, %p284_p1 }
   0x9   :  { %p287_p4 = pnand %p286_p3, %p280_p0 }
   0xb   :  { %290 = shalt.err (!%p287_p4)
}
   0xc   :  { %s359_s17 = smov 128   ;;  %s360_s18 = smov 8  }
   0xd   :  { %34 = dma.hbm_to_vmem [thread:$0]  %s408_s1, 2048, %s29_s13, [#allocation7], %s359_s17, %s359_s17, %s360_s18  }
   0xe   :  { %s299_s21 = scalar_lea.vmem %s17_s15, 256  ;;  %p304_p6 = scmp.lt.s32.totalorder %s17_s15, %s17_s15 }
   0xf   :  { %p300_p5 = scmp.ne.s32.totalorder %s17_s15, %s299_s21  ;;  %p305_p7 = scmp.lt.s32.totalorder %s299_s21, %s299_s21 }
  0x11   :  { %p306_p8 = por %p305_p7, %p304_p6 }
  0x13   :  { %p307_p9 = pnand %p306_p8, %p300_p5 }
  0x15   :  { %310 = shalt.err (!%p307_p9)
}
  0x16   :  { %22 = dma.hbm_to_vmem [thread:$0]  %s407_s0, 256, %s17_s15, [#allocation4], %s359_s17, %s359_s17, %s360_s18  }
  0x17   :  { %s361_s24 = smov [#allocation8]  }
  0x18   :  { %s40_s25 = sshll.u32 %s361_s24, 4  ;;  %s41_s25 = int_to_ptr.vmem [resolvable:$true] %s40_s25 }
  0x19   :  { %s319_s26 = scalar_lea.vmem %s41_s25, 256  ;;  %p324_p11 = scmp.lt.s32.totalorder %s41_s25, %s41_s25 }
  0x1a   :  { %p320_p10 = scmp.ne.s32.totalorder %s41_s25, %s319_s26  ;;  %p325_p12 = scmp.lt.s32.totalorder %s319_s26, %s319_s26 }
  0x1c   :  { %p326_p13 = por %p325_p12, %p324_p11 }
  0x1e   :  { %p327_p0 = pnand %p326_p13, %p320_p10 }
  0x20   :  { %330 = shalt.err (!%p327_p0)
}
  0x21   :  { %46 = dma.hbm_to_vmem [thread:$0]  %s409_s2, 256, %s41_s25, [#allocation7], %s359_s17, %s359_s17, %s360_s18  }
  0x22   :  { %351 = dma.done.wait [#allocation4], 256  }
  0x23   :  { %352 = vsyncadd [#allocation4], 4294967040 }
  0x24   :  { %353 = dma.done.wait [#allocation7], 2304  }
  0x25   :  { %354 = vsyncadd [#allocation7], 4294964992  ;;  %v81_v0 = vld [vmem:[#allocation6 + $0x78] sm:$0xff]  ;;  %v80_v1 = vld [vmem:[#allocation6 + $0x70] sm:$0xff]  ;;  %s362_s0 = smov [#allocation9]  }
  0x26   :  { %222 = vmatprep.subr.mxu0 %v81_v0  ;;  %v79_v2 = vld [vmem:[#allocation6 + $0x68] sm:$0xff]  ;;  %v64_v3 = vld [vmem:[#allocation3] sm:$0xff]  ;;  %v78_v4 = vld [vmem:[#allocation6 + $0x60] sm:$0xff]  ;;  %s189_s2 = sshll.u32 %s362_s0, 4  ;;  %s190_s2 = int_to_ptr.vmem [resolvable:$true] %s189_s2 }
  0x27   :  { %223 = vmatpush3.xpose.msra.mxu0 %v81_v0  ;;  %254 = vmatprep.mubr.f32.mxu0 %v64_v3  ;;  %v77_v5 = vld [vmem:[#allocation6 + $0x58] sm:$0xff]  ;;  %v76_v6 = vld [vmem:[#allocation6 + $0x50] sm:$0xff]  ;;  %v75_v7 = vld [vmem:[#allocation6 + $0x48] sm:$0xff]  ;;  %s331_s28 = scalar_lea.vmem %s190_s2, 256  ;;  %p336_p2 = scmp.lt.s32.totalorder %s190_s2, %s190_s2 }
  0x28   :  { %224 = vmatprep.subr.mxu0 %v80_v1  ;;  %v74_v8 = vld [vmem:[#allocation6 + $0x40] sm:$0xff]  ;;  %v73_v9 = vld [vmem:[#allocation6 + $0x38] sm:$0xff]  ;;  %v72_v10 = vld [vmem:[#allocation6 + $0x30] sm:$0xff]  ;;  %p332_p1 = scmp.ne.s32.totalorder %s190_s2, %s331_s28  ;;  %p337_p3 = scmp.lt.s32.totalorder %s331_s28, %s331_s28 }
  0x29   :  { %v71_v11 = vld [vmem:[#allocation6 + $0x28] sm:$0xff]  ;;  %v70_v12 = vld [vmem:[#allocation6 + $0x20] sm:$0xff]  ;;  %v69_v13 = vld [vmem:[#allocation6 + $0x18] sm:$0xff] }
  0x2a   :  { %v68_v14 = vld [vmem:[#allocation6 + $0x10] sm:$0xff]  ;;  %v67_v15 = vld [vmem:[#allocation6 + $0x8] sm:$0xff]  ;;  %v66_v16 = vld [vmem:[#allocation6] sm:$0xff]  ;;  %p338_p4 = por %p337_p3, %p336_p2 }
  0x2b   :  { %225 = vmatpush3.xpose.msra.mxu0 %v80_v1  ;;  %v65_v17 = vld [vmem:[#allocation3 + $0x8] sm:$0xff]  ;;  %v165_v18 = vld [vmem:[#allocation8 + $0x8] sm:$0xff]  ;;  %v164_v19 = vld [vmem:[#allocation8] sm:$0xff] }
  0x2c   :  { %226 = vmatprep.subr.mxu0 %v79_v2  ;;  %v203_v20 = vmul.f32 -1.442695, %v165_v18  ;;  %v202_v21 = vmul.f32 -1.442695, %v164_v19  ;;  %p339_p5 = pnand %p338_p4, %p332_p1 }
  0x2e   :  { %263 = vpow2.f32 %v203_v20 }
  0x2f   :  { %227 = vmatpush3.xpose.msra.mxu0 %v79_v2  ;;  %265 = vpow2.f32 %v202_v21 }
  0x30   :  { %228 = vmatprep.subr.mxu0 %v78_v4 }
  0x33   :  { %229 = vmatpush3.xpose.msra.mxu0 %v78_v4 }
  0x34   :  { %230 = vmatprep.subr.mxu0 %v77_v5 }
  0x37   :  { %231 = vmatpush3.xpose.msra.mxu0 %v77_v5 }
  0x38   :  { %232 = vmatprep.subr.mxu0 %v76_v6 }
  0x3b   :  { %233 = vmatpush3.xpose.msra.mxu0 %v76_v6  ;;  %v264_v22 = vpop.eup %263 }
  0x3c   :  { %234 = vmatprep.subr.mxu0 %v75_v7  ;;  %v266_v23 = vpop.eup %265  ;;  %v173_v24 = vadd.f32 1.0, %v264_v22 }
  0x3d   :  { %v172_v25 = vadd.f32 1.0, %v266_v23 }
  0x3e   :  { %267 = vrcp.f32 %v173_v24 }
  0x3f   :  { %235 = vmatpush3.xpose.msra.mxu0 %v75_v7  ;;  %269 = vrcp.f32 %v172_v25 }
  0x40   :  { %236 = vmatprep.subr.mxu0 %v74_v8 }
  0x43   :  { %237 = vmatpush3.xpose.msra.mxu0 %v74_v8 }
  0x44   :  { %238 = vmatprep.subr.mxu0 %v73_v9 }
  0x47   :  { %239 = vmatpush3.xpose.msra.mxu0 %v73_v9 }
  0x48   :  { %240 = vmatprep.subr.mxu0 %v72_v10 }
  0x4b   :  { %241 = vmatpush3.xpose.msra.mxu0 %v72_v10  ;;  %v268_v26 = vpop.eup %267 }
  0x4c   :  { %242 = vmatprep.subr.mxu0 %v71_v11  ;;  %v270_v27 = vpop.eup %269 }
  0x4f   :  { %243 = vmatpush3.xpose.msra.mxu0 %v71_v11 }
  0x50   :  { %244 = vmatprep.subr.mxu0 %v70_v12 }
  0x53   :  { %245 = vmatpush3.xpose.msra.mxu0 %v70_v12 }
  0x54   :  { %246 = vmatprep.subr.mxu0 %v69_v13 }
  0x57   :  { %247 = vmatpush3.xpose.msra.mxu0 %v69_v13 }
  0x58   :  { %248 = vmatprep.subr.mxu0 %v68_v14 }
  0x5b   :  { %249 = vmatpush3.xpose.msra.mxu0 %v68_v14 }
  0x5c   :  { %250 = vmatprep.subr.mxu0 %v67_v15 }
  0x5f   :  { %251 = vmatpush3.xpose.msra.mxu0 %v67_v15 }
  0x60   :  { %252 = vmatprep.subr.mxu0 %v66_v16 }
  0x63   :  { %253 = vmatpush3.xpose.msra.mxu0 %v66_v16 }
  0x66   :  { %255 = vmatmul.mubr.f32.vlgmr.msra.gmra.mxu0 %v65_v17 }
 0x126   :  { %v256_v28 = vpop.f32.mrf.mxu0 }
 0x127   :  { %v181_v29 = vmul.f32 %v268_v26, %v256_v28 }
 0x128   :  { %v148_v30 = vpop.f32.mrf.mxu0 }
 0x129   :  { %183 = vst [vmem:[#allocation9 + $0x8] sm:$0xff] %v181_v29  ;;  %v180_v31 = vmul.f32 %v270_v27, %v148_v30 }
 0x12b   :  { %182 = vst [vmem:[#allocation9] sm:$0xff] %v180_v31 }
 0x12c   :  { %342 = shalt.err (!%p339_p5)
}
 0x12d   :  { %195 = dma.vmem_to_hbm [thread:$0]  %s190_s2, 256, %s410_s3, [#allocation5], %s359_s17, %s359_s17, %s360_s18  }
 0x12e   :  { %355 = dma.done.wait [#allocation5], 256  }
 0x12f   :  { %356 = vsyncadd [#allocation5], 4294967040 }
 0x130   :  { %199 = vsyncpa [#allocation4], 1 }
 0x131   :  { %200 = vsyncpa [#allocation7], 1 }
 0x132   :  { %201 = vsyncpa [#allocation5], 1 }

</bundles_post_ra>
